<compile_context>
chip_gen: v7x
topology: tpu7x:2x2x1
jax: 0.10.0
libtpu: 0.0.40
codegen_flags: <defaults>
</compile_context>

<pallas_src>
import functools

import jax
import jax.numpy as jnp
from jax.experimental import pallas as pl
from jax.experimental.pallas import tpu as pltpu

N_SHIFT = 23                      # self.n in the PyTorch module
_INT31_MAX = float(2 ** 31 - 1)   # rounds to 2^31 in f32, same as torch's f32 math


def _round_up(x, m):
    return (x + m - 1) // m * m


def _exact_pow2_kernel(k_float):
    """2**k for integer-valued k >= 0, built from exponent bits (VALU only).

    For well-formed inputs k = N_SHIFT - q is always >= 0 (exp_int path) and
    small (exp_int_max path); the max-with-0 only guards garbage rows in the
    ragged tail grid block, whose results are never written back.
    """
    k = jnp.maximum(k_float, 0.0).astype(jnp.int32)
    return pltpu.bitcast((k + 127) << 23, jnp.float32)


def _int_exp_shift_kernel(x_int, x0_int, inv_x0):
    """Integer-friendly exp approximation (matches IntGELU.int_exp_shift)."""
    x_int = x_int + jnp.floor(x_int * 0.5) - jnp.floor(x_int * 0.0625)
    x_int = jnp.maximum(x_int, N_SHIFT * x0_int)
    q = jnp.floor(x_int * inv_x0)
    r = x_int - x0_int * q
    exp_val = r * 0.5 - x0_int
    exp_int = jnp.floor(exp_val * _exact_pow2_kernel(N_SHIFT - q))
    return jnp.maximum(exp_int, 0.0)


def _int_gelu_kernel(params_ref, x_ref, out_ref, *, output_bit):
    # SMEM scalar parameters precomputed in the wrapper.
    inv_sf = params_ref[0]     # 1 / scaling_factor
    x0_int = params_ref[1]     # floor(-1 / (1.702 * scaling_factor))
    inv_x0 = params_ref[2]     # 1 / x0_int
    out_scale = params_ref[3]  # scaling_factor / 2**(output_bit - 1)

    x = x_ref[...]                                  # (TR, H) f32 tile
    pre_x_int = x * inv_sf

    # Row-wise max over the hidden (lane) dim; Mosaic masks the partial lane
    # tile when H is not a multiple of 128 (block last dim == array last dim).
    x_int_max = jnp.max(pre_x_int, axis=-1, keepdims=True)   # (TR, 1)
    x_int = pre_x_int - x_int_max

    exp_int = _int_exp_shift_kernel(x_int, x0_int, inv_x0)           # (TR, H)
    exp_int_max = _int_exp_shift_kernel(-x_int_max, x0_int, inv_x0)  # (TR, 1)

    exp_int_sum = jnp.minimum(exp_int + exp_int_max, _INT31_MAX)
    exp_int_sum = jnp.maximum(exp_int_sum, 1.0)     # guard 0/0 (torch would NaN)

    # Exact f32 divide kept on purpose: an approximate reciprocal + fix-up
    # cannot guarantee the same floor at q*s ~ 2^31 magnitudes in f32, and
    # the double-floor below is sensitive to the last ulp of the quotient.
    factor = jnp.floor(_INT31_MAX / exp_int_sum)
    sigmoid_int = jnp.floor(
        exp_int * factor * (2.0 ** -(31 - output_bit + 1)))

    out_ref[...] = (pre_x_int * sigmoid_int * out_scale).astype(out_ref.dtype)


def int_gelu(x, scaling_factor, *, output_bit=8, row_tile=512,
             out_dtype=jnp.float32):
    """x: (..., hidden) float; scaling_factor: shape-(1,) float.

    Returns (y, new_scaling_factor), matching IntGELU.forward.
    `out_dtype=jnp.bfloat16` halves store traffic (useful on v5e) if the
    consumer tolerates it; default keeps float32 fidelity.
    """
    orig_shape = x.shape
    hidden = int(orig_shape[-1])
    rows = 1
    for d in orig_shape[:-1]:
        rows *= int(d)

    x2d = x.reshape(rows, hidden).astype(jnp.float32)
    sf = jnp.reshape(scaling_factor, ()).astype(jnp.float32)

    # Scalar parameters (computed once in the wrapper, not per grid step).
    sigmoid_sf = jnp.float32(1.0 / 2 ** (output_bit - 1))
    sf_out = (sf * sigmoid_sf).reshape(1)
    sf_sig = sf * jnp.float32(1.702)
    x0_int = jnp.floor(-1.0 / sf_sig)
    params = jnp.stack([1.0 / sf, x0_int, 1.0 / x0_int, sf * sigmoid_sf]
                       ).astype(jnp.float32)

    # ---- tiling (no padding, ragged tail handled by Pallas) ----
    # VMEM budget per element of a block: 2x double-buffered in + out (16 B)
    # plus ~4 live block-sized f32 temporaries (16 B) -> ~32 B/elem.
    vmem_working_budget = 24 * 1024 * 1024
    rt_cap = max(8, (vmem_working_budget // (32 * hidden)) // 8 * 8)
    rt = min(int(row_tile), rt_cap, _round_up(rows, 8))
    if rows > 8:
        # Guarantee >= 2 grid steps so the "parallel" axis can shard across
        # both v7x TensorCores (also halves per-TC VMEM pressure).
        rt = min(rt, _round_up((rows + 1) // 2, 8))
    rt = max(8, (rt // 8) * 8)
    grid = pl.cdiv(rows, rt)

    kernel = functools.partial(_int_gelu_kernel, output_bit=output_bit)

    y2d = pl.pallas_call(
        kernel,
        out_shape=jax.ShapeDtypeStruct((rows, hidden), out_dtype),
        grid_spec=pltpu.PrefetchScalarGridSpec(
            num_scalar_prefetch=0,
            grid=(grid,),
            in_specs=[
                pl.BlockSpec(memory_space=pltpu.MemorySpace.SMEM),  # params
                pl.BlockSpec((rt, hidden), lambda i: (i, 0)),       # x tile
            ],
            out_specs=pl.BlockSpec((rt, hidden), lambda i: (i, 0)),
        ),
        compiler_params=pltpu.CompilerParams(
            dimension_semantics=("parallel",),
            vmem_limit_bytes=48 * 1024 * 1024,
        ),
    )(params, x2d)

    return y2d.reshape(orig_shape), sf_out


def int_gelu_reference(x, scaling_factor, output_bit=8):
    """Pure-JAX reference mirroring the kernel's op sequence (same math as the
    PyTorch forward up to the documented reciprocal substitutions)."""
    sf = jnp.reshape(scaling_factor, ()).astype(jnp.float32)
    inv_sf = 1.0 / sf
    sf_sig = sf * jnp.float32(1.702)
    x0_int = jnp.floor(-1.0 / sf_sig)
    inv_x0 = 1.0 / x0_int

    pre_x_int = x.astype(jnp.float32) * inv_sf
    x_int_max = jnp.max(pre_x_int, axis=-1, keepdims=True)
    x_int = pre_x_int - x_int_max

    def int_exp_shift(xi):
        xi = xi + jnp.floor(xi * 0.5) - jnp.floor(xi * 0.0625)
        xi = jnp.maximum(xi, N_SHIFT * x0_int)
        q = jnp.floor(xi * inv_x0)
        r = xi - x0_int * q
        k = jnp.maximum(N_SHIFT - q, 0.0).astype(jnp.int32)
        pow2 = jax.lax.bitcast_convert_type((k + 127) << 23, jnp.float32)
        return jnp.maximum(jnp.floor((r * 0.5 - x0_int) * pow2), 0.0)

    exp_int = int_exp_shift(x_int)
    exp_int_max = int_exp_shift(-x_int_max)
    exp_int_sum = jnp.minimum(exp_int + exp_int_max, _INT31_MAX)
    exp_int_sum = jnp.maximum(exp_int_sum, 1.0)
    factor = jnp.floor(_INT31_MAX / exp_int_sum)
    sigmoid_int = jnp.floor(exp_int * factor * (2.0 ** -(31 - output_bit + 1)))
    sigmoid_sf = jnp.float32(1.0 / 2 ** (output_bit - 1))
    sf_out = (sf * sigmoid_sf).reshape(1)
    return pre_x_int * sigmoid_int * sf_out, sf_out


if __name__ == "__main__":
    key = jax.random.PRNGKey(0)
    k1, k2 = jax.random.split(key)

    # Case 1: small transformer-like activation; hidden=32 (< 128) exercises
    # the unpadded, non-128-multiple lane path; rows=16 gives a 2-step grid.
    batch, seq, hidden = 2, 8, 32
    x1 = jax.random.normal(k1, (batch, seq, hidden), dtype=jnp.float32) * 2.0
    sf1 = jnp.array([0.05], dtype=jnp.float32)
    y1, s1 = int_gelu(x1, sf1, output_bit=8)
    y1 = jax.block_until_ready(y1)
    s1 = jax.block_until_ready(s1)
    y1_ref, s1_ref = int_gelu_reference(x1, sf1, output_bit=8)
    assert y1.shape == x1.shape and s1.shape == (1,)
    assert jnp.allclose(y1, y1_ref, rtol=1e-5, atol=1e-5), "case1 mismatch"
    assert jnp.allclose(s1, s1_ref), "case1 scaling factor mismatch"

    # Case 2: odd shapes -> rows=21 exercises the ragged tail grid block
    # (clipped write-back), hidden=160 exercises a non-128-multiple lane dim.
    x2 = jax.random.normal(k2, (3, 7, 160), dtype=jnp.float32) * 1.5
    sf2 = jnp.array([0.02], dtype=jnp.float32)
    y2, s2 = int_gelu(x2, sf2, output_bit=8)
    y2 = jax.block_until_ready(y2)
    y2_ref, s2_ref = int_gelu_reference(x2, sf2, output_bit=8)
    assert y2.shape == x2.shape
    assert jnp.allclose(y2, y2_ref, rtol=1e-5, atol=1e-5), "case2 mismatch"
    assert jnp.allclose(s2, s2_ref), "case2 scaling factor mismatch"

    print("KERNEL_OK")
</pallas_src>

<mosaic_0001>
module attributes {stable_mosaic.version = 11 : i64} {
  func.func @_int_gelu_kernel(%arg0: i32, %arg1: memref<4xf32, #tpu.memory_space<smem>>, %arg2: memref<8x32xf32, #tpu.memory_space<vmem>>, %arg3: memref<8x32xf32, #tpu.memory_space<vmem>>) attributes {dimension_semantics = [#tpu.dimension_semantics<parallel>], iteration_bounds = array<i64: 2>, scalar_prefetch = 0 : i64, scratch_operands = 0 : i64, tpu.core_type = #tpu.core_type<tc>, window_params = [{transform_indices = @transform_0, window_bounds = array<i64: 4>}, {transform_indices = @transform_1, window_bounds = array<i64: 8, 32>}, {transform_indices = @transform_2, window_bounds = array<i64: 8, 32>}]} {
    %c0 = arith.constant 0 : index
    %0 = memref.load %arg1[%c0] : memref<4xf32, #tpu.memory_space<smem>>
    %c1 = arith.constant 1 : index
    %1 = memref.load %arg1[%c1] : memref<4xf32, #tpu.memory_space<smem>>
    %c2 = arith.constant 2 : index
    %2 = memref.load %arg1[%c2] : memref<4xf32, #tpu.memory_space<smem>>
    %c3 = arith.constant 3 : index
    %3 = memref.load %arg1[%c3] : memref<4xf32, #tpu.memory_space<smem>>
    %c0_0 = arith.constant 0 : index
    %c0_1 = arith.constant 0 : index
    %4 = vector.load %arg2[%c0_0, %c0_1] : memref<8x32xf32, #tpu.memory_space<vmem>>, vector<8x32xf32>
    %5 = vector.broadcast %0 : f32 to vector<8x32xf32>
    %6 = arith.mulf %4, %5 : vector<8x32xf32>
    %cst = arith.constant dense<0xFF800000> : vector<8xf32>
    %7 = vector.multi_reduction <maximumf>, %6, %cst [1] : vector<8x32xf32> to vector<8xf32>
    %8 = vector.shape_cast %7 : vector<8xf32> to vector<8x1xf32>
    %9 = vector.broadcast %8 : vector<8x1xf32> to vector<8x32xf32>
    %10 = arith.subf %6, %9 : vector<8x32xf32>
    %cst_2 = arith.constant 5.000000e-01 : f32
    %11 = vector.broadcast %cst_2 : f32 to vector<8x32xf32>
    %12 = arith.mulf %10, %11 : vector<8x32xf32>
    %13 = math.floor %12 : vector<8x32xf32>
    %14 = arith.addf %10, %13 : vector<8x32xf32>
    %cst_3 = arith.constant 6.250000e-02 : f32
    %15 = vector.broadcast %cst_3 : f32 to vector<8x32xf32>
    %16 = arith.mulf %10, %15 : vector<8x32xf32>
    %17 = math.floor %16 : vector<8x32xf32>
    %18 = arith.subf %14, %17 : vector<8x32xf32>
    %cst_4 = arith.constant 2.300000e+01 : f32
    %19 = arith.mulf %cst_4, %1 : f32
    %20 = vector.broadcast %19 : f32 to vector<8x32xf32>
    %21 = arith.maximumf %18, %20 : vector<8x32xf32>
    %22 = vector.broadcast %2 : f32 to vector<8x32xf32>
    %23 = arith.mulf %21, %22 : vector<8x32xf32>
    %24 = math.floor %23 : vector<8x32xf32>
    %25 = vector.broadcast %1 : f32 to vector<8x32xf32>
    %26 = arith.mulf %25, %24 : vector<8x32xf32>
    %27 = arith.subf %21, %26 : vector<8x32xf32>
    %cst_5 = arith.constant 5.000000e-01 : f32
    %28 = vector.broadcast %cst_5 : f32 to vector<8x32xf32>
    %29 = arith.mulf %27, %28 : vector<8x32xf32>
    %30 = vector.broadcast %1 : f32 to vector<8x32xf32>
    %31 = arith.subf %29, %30 : vector<8x32xf32>
    %cst_6 = arith.constant 2.300000e+01 : f32
    %32 = vector.broadcast %cst_6 : f32 to vector<8x32xf32>
    %33 = arith.subf %32, %24 : vector<8x32xf32>
    %cst_7 = arith.constant 0.000000e+00 : f32
    %34 = vector.broadcast %cst_7 : f32 to vector<8x32xf32>
    %35 = arith.maximumf %33, %34 : vector<8x32xf32>
    %36 = arith.fptosi %35 : vector<8x32xf32> to vector<8x32xi32>
    %c127_i32 = arith.constant 127 : i32
    %37 = vector.broadcast %c127_i32 : i32 to vector<8x32xi32>
    %38 = arith.addi %36, %37 : vector<8x32xi32>
    %c23_i32 = arith.constant 23 : i32
    %39 = vector.broadcast %c23_i32 : i32 to vector<8x32xi32>
    %40 = arith.shli %38, %39 : vector<8x32xi32>
    %41 = tpu.bitcast %40 : vector<8x32xi32> -> vector<8x32xf32>
    %42 = arith.mulf %31, %41 : vector<8x32xf32>
    %43 = math.floor %42 : vector<8x32xf32>
    %cst_8 = arith.constant 0.000000e+00 : f32
    %44 = vector.broadcast %cst_8 : f32 to vector<8x32xf32>
    %45 = arith.maximumf %43, %44 : vector<8x32xf32>
    %cst_9 = arith.constant 0.000000e+00 : f32
    %46 = vector.broadcast %cst_9 : f32 to vector<8x1xf32>
    %47 = arith.subf %46, %8 : vector<8x1xf32>
    %cst_10 = arith.constant 5.000000e-01 : f32
    %48 = vector.broadcast %cst_10 : f32 to vector<8x1xf32>
    %49 = arith.mulf %47, %48 : vector<8x1xf32>
    %50 = math.floor %49 : vector<8x1xf32>
    %51 = arith.addf %47, %50 : vector<8x1xf32>
    %cst_11 = arith.constant 6.250000e-02 : f32
    %52 = vector.broadcast %cst_11 : f32 to vector<8x1xf32>
    %53 = arith.mulf %47, %52 : vector<8x1xf32>
    %54 = math.floor %53 : vector<8x1xf32>
    %55 = arith.subf %51, %54 : vector<8x1xf32>
    %cst_12 = arith.constant 2.300000e+01 : f32
    %56 = arith.mulf %cst_12, %1 : f32
    %57 = vector.broadcast %56 : f32 to vector<8x1xf32>
    %58 = arith.maximumf %55, %57 : vector<8x1xf32>
    %59 = vector.broadcast %2 : f32 to vector<8x1xf32>
    %60 = arith.mulf %58, %59 : vector<8x1xf32>
    %61 = math.floor %60 : vector<8x1xf32>
    %62 = vector.broadcast %1 : f32 to vector<8x1xf32>
    %63 = arith.mulf %62, %61 : vector<8x1xf32>
    %64 = arith.subf %58, %63 : vector<8x1xf32>
    %cst_13 = arith.constant 5.000000e-01 : f32
    %65 = vector.broadcast %cst_13 : f32 to vector<8x1xf32>
    %66 = arith.mulf %64, %65 : vector<8x1xf32>
    %67 = vector.broadcast %1 : f32 to vector<8x1xf32>
    %68 = arith.subf %66, %67 : vector<8x1xf32>
    %cst_14 = arith.constant 2.300000e+01 : f32
    %69 = vector.broadcast %cst_14 : f32 to vector<8x1xf32>
    %70 = arith.subf %69, %61 : vector<8x1xf32>
    %cst_15 = arith.constant 0.000000e+00 : f32
    %71 = vector.broadcast %cst_15 : f32 to vector<8x1xf32>
    %72 = arith.maximumf %70, %71 : vector<8x1xf32>
    %73 = arith.fptosi %72 : vector<8x1xf32> to vector<8x1xi32>
    %c127_i32_16 = arith.constant 127 : i32
    %74 = vector.broadcast %c127_i32_16 : i32 to vector<8x1xi32>
    %75 = arith.addi %73, %74 : vector<8x1xi32>
    %c23_i32_17 = arith.constant 23 : i32
    %76 = vector.broadcast %c23_i32_17 : i32 to vector<8x1xi32>
    %77 = arith.shli %75, %76 : vector<8x1xi32>
    %78 = tpu.bitcast %77 : vector<8x1xi32> -> vector<8x1xf32>
    %79 = arith.mulf %68, %78 : vector<8x1xf32>
    %80 = math.floor %79 : vector<8x1xf32>
    %cst_18 = arith.constant 0.000000e+00 : f32
    %81 = vector.broadcast %cst_18 : f32 to vector<8x1xf32>
    %82 = arith.maximumf %80, %81 : vector<8x1xf32>
    %83 = vector.broadcast %82 : vector<8x1xf32> to vector<8x32xf32>
    %84 = arith.addf %45, %83 : vector<8x32xf32>
    %cst_19 = arith.constant 2.14748365E+9 : f32
    %85 = vector.broadcast %cst_19 : f32 to vector<8x32xf32>
    %86 = arith.minimumf %84, %85 : vector<8x32xf32>
    %cst_20 = arith.constant 1.000000e+00 : f32
    %87 = vector.broadcast %cst_20 : f32 to vector<8x32xf32>
    %88 = arith.maximumf %86, %87 : vector<8x32xf32>
    %cst_21 = arith.constant 2.14748365E+9 : f32
    %89 = vector.broadcast %cst_21 : f32 to vector<8x32xf32>
    %90 = arith.divf %89, %88 : vector<8x32xf32>
    %91 = math.floor %90 : vector<8x32xf32>
    %92 = arith.mulf %45, %91 : vector<8x32xf32>
    %cst_22 = arith.constant 5.96046448E-8 : f32
    %93 = vector.broadcast %cst_22 : f32 to vector<8x32xf32>
    %94 = arith.mulf %92, %93 : vector<8x32xf32>
    %95 = math.floor %94 : vector<8x32xf32>
    %96 = arith.mulf %6, %95 : vector<8x32xf32>
    %97 = vector.broadcast %3 : f32 to vector<8x32xf32>
    %98 = arith.mulf %96, %97 : vector<8x32xf32>
    %c0_23 = arith.constant 0 : index
    %c0_24 = arith.constant 0 : index
    %99 = vector.load %arg3[%c0_23, %c0_24] : memref<8x32xf32, #tpu.memory_space<vmem>>, vector<8x32xf32>
    tpu.vector_store %arg3[%c0_23, %c0_24], %98 {strides = array<i32>} : memref<8x32xf32, #tpu.memory_space<vmem>>, vector<8x32xf32>,
    return
  }
  func.func @transform_0(%arg0: i32) -> i32 {
    %c0_i32 = arith.constant 0 : i32
    %c0_i32_0 = arith.constant 0 : i32
    return %c0_i32 : i32
  }
  func.func @transform_1(%arg0: i32) -> (i32, i32) {
    %c0_i32 = arith.constant 0 : i32
    %c0_i32_0 = arith.constant 0 : i32
    return %arg0, %c0_i32 : i32, i32
  }
  func.func @transform_2(%arg0: i32) -> (i32, i32) {
    %c0_i32 = arith.constant 0 : i32
    %c0_i32_0 = arith.constant 0 : i32
    return %arg0, %c0_i32 : i32, i32
  }
}

</mosaic_0001>

<bundles_post_ra>
// kernel: tpu_custom_call.1
= control target key start
LH: loop header
LB: loop body
LE: loop exit
PB: predicated region body
PF: predicated region fallthrough
CT: control target
= control target key end

     0   :  { %7 = vsyncpa [#allocation5], 0  ;;  %s770_s0 = inlined_call_operand.hbm [shape: f32[4], index: 0, kind: input, shape index: {}]   ;;  %s771_s1 = inlined_call_operand.hbm [shape: f32[16,32], index: 1, kind: input, shape index: {}]   ;;  %s772_s2 = inlined_call_operand.hbm [shape: f32[16,32], index: 2, kind: output, shape index: {}]  }
   0x1   :  { %8 = vsyncpa [#allocation3], 0 }
   0x2   :  { %10 = vsyncpa [#allocation3 + $0x1], 0 }
   0x3   :  { %11 = vsyncpa [#allocation4], 0 }
   0x4   :  { %13 = vsyncpa [#allocation4 + $0x1], 0  ;;  %s554_s9 = smov 0   ;;  %s556_s10 = smov 0  }
   0x5   :  { %s558_s11 = smov 0   ;;  %s560_s12 = smov 0  }
   0x6 LB: > { %s575_s13 = sadd.s32 4294967295, %s534_s12   ;;  %s341_s14 = sadd.s32 4294967294, %s534_s12   ;;  %s534_s12 = sphi %s560_s12, %s793_s12   ;;  %s530_s11 = sphi %s558_s11, %s792_s11   ;;  %s526_s10 = sphi %s556_s10, %s791_s10   ;;  %s522_s9 = sphi %s554_s9, %s790_s9  }
   0x7   : > { %p60_p0 = scmp.ne.s32.totalorder %s526_s10, %s522_s9  ;;  %p773_p1 = scmp.eq.s32.totalorder %s575_s13, 0 }
   0x8   : > { %p90_p3 = scmp.eq.s32.totalorder %s341_s14, 1  ;;  %p342_p5 = scmp.ge.s32.totalorder %s534_s12, 1 }
   0x9   : > { %p584_p4 = por %p773_p1, %p60_p0  ;;  %p97_p7 = scmp.lt.s32.totalorder %s534_s12, 3 }
   0xa   : > { %p589_p6 = por %p90_p3, %p60_p0  ;;  %s600_s18 = sadd.s32 1, %s534_s12  }
   0xb   : > { %s776_s15 = scalar_select %p584_p4, 1, 0 }
   0xc   : > { %s777_s16 = scalar_select %p589_p6, 1, 0 }
   0xd   : > { %p594_p8 = pnand %p342_p5, %p97_p7  ;;  %s44_s19 = ssub.s32 %s534_s12, %s600_s18 }
   0xe   : > { %s47_s20 = sadd.s32 1, %s530_s11  ;;  %p613_p12 = scmp.eq.s32.totalorder %s44_s19, 0 }
   0xf   : > { %p370_p10 = pneg %p594_p8  ;;  %p54_p13 = scmp.ne.s32.totalorder %s530_s11, %s526_s10 }
  0x10   : > { %p55_p0 = scmp.eq.s32.totalorder %s534_s12, 0  ;;  %p383_p3 = scmp.lt.s32.totalorder %s534_s12, 2 }
  0x11   : > { %p609_p11 = pnand %p370_p10, %p773_p1  ;;  %s421_s25 = scalar_lea.hbm %s770_s0, 16 }
  0x12   : > { %p422_p5 = scmp.ne.s32.totalorder %s770_s0, %s421_s25  ;;  %p428_p1 = scmp.lt.u32.totalorder %s421_s25, %s770_s0 }
  0x13   : > { %p423_p7 = pneg %p609_p11 }
  0x15   : > { %p424_p10 = pnand %p423_p7, %p422_p5 }
  0x17   : > { %p425_p9 = pneg %p424_p10 }
  0x19   : > { %p430_p2 = pnand %p428_p1, %p425_p9 }
  0x1b   : > { %433 = shalt.err (!%p430_p2)
}
  0x1c   : > { %s536_s30 = smov [#allocation2]   ;;  %p56_p1 = por %p55_p0, %p54_p13 }
  0x1d   : > { %373 = dma.hbm_to_smem (!%p609_p11), %s770_s0, 16, %s536_s30, [#allocation5]  }
  0x1e   : > { %s640_s5 = scalar_select %p613_p12, %s530_s11, %s47_s20  }
  0x1f   : > { %p781_p2 = scmp.eq.s32.totalorder %s575_s13, 1  ;;  %s119_s7 = sand.u32 1, %s530_s11  }
  0x20   : > { %s346_s8 = sshll.u32 %s534_s12, 7  ;;  %s345_s14 = sshll.u32 %s119_s7, 3 }
  0x21   : > { %p652_p9 = por %p781_p2, %p54_p13  ;;  %s661_s23 = scalar_lea.hbm %s771_s1, %s346_s8 }
  0x22   : > { %s123_s20 = scalar_lea.vmem [#allocation6], %s345_s14  ;;  %p665_p11 = pnand %p383_p3, %p56_p1 }
  0x23   : > { %s782_s6 = scalar_select %p652_p9, 1, 0 }
  0x24   : > { %s130_s22 = sshll.u32 %s123_s20, 4  ;;  %s120_s25 = scalar_lea.sflag [#allocation3], %s119_s7  ;;  %s669_s22 = int_to_ptr.vmem [resolvable:$true] %s130_s22 }
  0x25   : > { %s434_s26 = scalar_lea.hbm %s661_s23, 128  ;;  %p436_p13 = pneg %p665_p11 }
  0x26   : > { %p435_p12 = scmp.ne.s32.totalorder %s661_s23, %s434_s26  ;;  %s439_s29 = scalar_lea.hbm %s771_s1, 256 }
  0x27   : > { %p440_p3 = scmp.lt.u32.totalorder %s661_s23, %s771_s1  ;;  %p441_p7 = scmp.lt.u32.totalorder %s439_s29, %s434_s26 }
  0x28   : > { %p437_p0 = pnand %p436_p13, %p435_p12  ;;  %p443_p1 = scmp.lt.u32.totalorder %s434_s26, %s661_s23 }
  0x29   : > { %p442_p10 = por %p441_p7, %p440_p3 }
  0x2a   : > { %p438_p5 = pneg %p437_p0 }
  0x2b   : > { %p444_p2 = por %p443_p1, %p442_p10 }
  0x2d   : > { %p445_p6 = pnand %p444_p2, %p438_p5 }
  0x2f   : > { %448 = shalt.err (!%p445_p6)
}
  0x30   : > { %s449_s4 = scalar_lea.vmem %s669_s22, 128  ;;  %s537_s7 = smov [#allocation6]  }
  0x31   : > { %p450_p12 = scmp.ne.s32.totalorder %s669_s22, %s449_s4  ;;  %s454_s8 = sshll.u32 %s537_s7, 4  ;;  %s455_s8 = int_to_ptr.vmem [resolvable:$false] %s454_s8 }
  0x32   : > { %s456_s14 = scalar_lea.vmem %s455_s8, 256  ;;  %p457_p4 = scmp.lt.s32.totalorder %s669_s22, %s455_s8 }
  0x33   : > { %p452_p0 = pnand %p450_p12, %p436_p13  ;;  %p458_p3 = scmp.lt.s32.totalorder %s456_s14, %s449_s4 }
  0x35   : > { %p453_p9 = pneg %p452_p0  ;;  %p459_p7 = por %p458_p3, %p457_p4 }
  0x37   : > { %p460_p10 = pnand %p459_p7, %p453_p9 }
  0x39   : > { %463 = shalt.err (!%p460_p10)
}
  0x3a   : > { %377 = dma.hbm_to_vmem [thread:$0]  (!%p665_p11), %s661_s23, 128, %s669_s22, %s120_s25  }
  0x3b   : > { %139 = sbr.rel (%p594_p8) target bundleno = 304 (0x130), region = 28  ;;  %p784_p6 = scmp.eq.s32.totalorder (!%p594_p8), %s575_s13, 0 }
  0x42   : > { %509 = dma.done.wait (%p784_p6), [#allocation5], 16   ;;  %p785_p13 = pmov %p784_p6 }
  0x43   : > { %s703_s19 = sand.u32 1, %s526_s10   ;;  %p786_p4 = scmp.ne.s32.totalorder %s776_s15, 0 }
  0x44   : > { %511 = vsyncadd (%p785_p13), [#allocation5], 4294967280  ;;  %s349_s21 = sshll.u32 %s703_s19, 3  ;;  %s146_s20 = scalar_lea.sflag [#allocation3], %s703_s19 }
  0x45   : > { %s149_s23 = scalar_lea.vmem [#allocation6], %s349_s21 }
  0x46   : > { %513 = dma.done.wait (%p786_p4), %s146_s20, 128  }
  0x47   : > { %515 = vsyncadd (%p786_p4), %s146_s20, 4294967168 }
  0x48   : > { %154 = sfence }
  0x49   : > { %s171_s17 = sld [smem:[#allocation2]]  ;;  %v175_v0 = vld [vmem:[%s149_s23] sm:$0xff]  ;;  %vm178_vm0 = vcmask 261120   ;;  %s351_s22 = sld [smem:[#allocation2 + $0x1]] }
  0x4a   : > { %s352_s24 = sld [smem:[#allocation2 + $0x2]]  ;;  %s353_s25 = sld [smem:[#allocation2 + $0x3]] }
  0x4b   : > { %s355_s26 = sshll.u32 %s575_s13, 7  ;;  %s170_s27 = scalar_lea.vmem [#allocation7], %s349_s21 }
  0x4c   : > { %s259_s28 = sshll.u32 %s170_s27, 4  ;;  %s725_s3 = scalar_lea.hbm %s772_s2, %s355_s26  ;;  %s727_s28 = int_to_ptr.vmem [resolvable:$true] %s259_s28 }
  0x4d   : > { %s246_s4 = scalar_lea.sflag [#allocation4], %s703_s19  ;;  %s464_s13 = scalar_lea.vmem %s727_s28, 128 }
  0x4e   : > { %p465_p8 = scmp.ne.s32.totalorder %s727_s28, %s464_s13  ;;  %p787_p9 = scmp.ne.s32.totalorder %s782_s6, 0 }
  0x4f   : > { %v176_v1 = vstv %s171_s17  ;;  %s189_s15 = smul.f32 23.0, %s351_s22  ;;  %v195_v25 = vstv %s351_s22  ;;  %s538_s7 = smov [#allocation7]  }
  0x50   : > { %v713_v2 = vmul.f32 %v176_v1, %v175_v0  ;;  %v192_v20 = vstv %s352_s24  ;;  %v242_v63 = vstv %s353_s25  ;;  %p466_p11 = pnand %p465_p8, %p787_p9  ;;  %s468_s8 = sshll.u32 %s538_s7, 4  ;;  %s469_s8 = int_to_ptr.vmem [resolvable:$false] %s468_s8 }
  0x51   : > { %v190_v17 = vstv %s189_s15  ;;  %s470_s14 = scalar_lea.vmem %s469_s8, 256  ;;  %p471_p1 = scmp.lt.s32.totalorder %s727_s28, %s469_s8 }
  0x52   : > { %v179_v3 = vsel %vm178_vm0, %v713_v2, -inf  ;;  %p467_p5 = pneg %p466_p11  ;;  %p472_p2 = scmp.lt.s32.totalorder %s470_s14, %s464_s13 }
  0x53   : > { %180 = vmax.xlane.f32.xlu0 %v179_v3 }
  0x54   : > { %p473_p12 = por %p472_p2, %p471_p1 }
  0x56   : > { %p474_p0 = pnand %p473_p12, %p467_p5 }
  0xe0   : > { %v181_v4 = vpop.xlane.xlu0 %180 }
  0xe1   : > { %v182_v5 = vsub.f32 %v713_v2, %v181_v4  ;;  %v209_v6 = vsub.f32 0.0, %v181_v4 }
  0xe3   : > { %v183_v7 = vmul.f32 0.5, %v182_v5  ;;  %v186_v8 = vmul.f32 0.0625, %v182_v5  ;;  %v210_v9 = vmul.f32 0.5, %v209_v6  ;;  %v213_v10 = vmul.f32 0.0625, %v209_v6 }
  0xe5   : > { %v184_v11 = vfloor.f32 %v183_v7  ;;  %v211_v12 = vfloor.f32 %v210_v9  ;;  %v187_v14 = vfloor.f32 %v186_v8  ;;  %v214_v16 = vfloor.f32 %v213_v10 }
  0xe7   : > { %v185_v13 = vadd.f32 %v184_v11, %v182_v5  ;;  %v212_v15 = vadd.f32 %v211_v12, %v209_v6 }
  0xe9   : > { %v188_v18 = vsub.f32 %v185_v13, %v187_v14  ;;  %v215_v19 = vsub.f32 %v212_v15, %v214_v16 }
  0xeb   : > { %v191_v21 = vmax.f32 %v188_v18, %v190_v17  ;;  %v216_v22 = vmax.f32 %v215_v19, %v190_v17 }
  0xed   : > { %v193_v23 = vmul.f32 %v192_v20, %v191_v21  ;;  %v217_v24 = vmul.f32 %v216_v22, %v192_v20 }
  0xef   : > { %v194_v26 = vfloor.f32 %v193_v23  ;;  %v218_v27 = vfloor.f32 %v217_v24 }
  0xf1   : > { %v196_v28 = vmul.f32 %v195_v25, %v194_v26  ;;  %v200_v29 = vsub.f32 23.0, %v194_v26  ;;  %v219_v30 = vmul.f32 %v218_v27, %v195_v25  ;;  %v223_v31 = vsub.f32 23.0, %v218_v27 }
  0xf3   : > { %v197_v32 = vsub.f32 %v191_v21, %v196_v28  ;;  %v201_v33 = vmax.f32 %v200_v29, 0.0  ;;  %v220_v34 = vsub.f32 %v216_v22, %v219_v30  ;;  %v224_v35 = vmax.f32 %v223_v31, 0.0 }
  0xf5   : > { %v358_v36 = vtrunc.f32 %v201_v33  ;;  %v360_v37 = vtrunc.f32 %v224_v35  ;;  %v198_v38 = vmul.f32 0.5, %v197_v32  ;;  %v221_v40 = vmul.f32 0.5, %v220_v34 }
  0xf7   : > { %v359_v39 = vcvt.f32.s32 %v358_v36  ;;  %v361_v41 = vcvt.f32.s32 %v360_v37  ;;  %v199_v44 = vsub.f32 %v198_v38, %v195_v25  ;;  %v222_v46 = vsub.f32 %v221_v40, %v195_v25 }
  0xf9   : > { %v203_v42 = vadd.s32 127, %v359_v39  ;;  %v226_v43 = vadd.s32 127, %v361_v41 }
  0xfb   : > { %v204_v45 = vshll.u32 %v203_v42, 23  ;;  %v227_v47 = vshll.u32 %v226_v43, 23 }
  0xfd   : > { %v206_v48 = vmul.f32 %v204_v45, %v199_v44  ;;  %v229_v49 = vmul.f32 %v227_v47, %v222_v46 }
  0xff   : > { %v230_v50 = vfloor.f32 %v229_v49  ;;  %v207_v51 = vfloor.f32 %v206_v48 }
 0x101   : > { %v231_v52 = vmax.f32 %v230_v50, 0.0  ;;  %v208_v53 = vmax.f32 %v207_v51, 0.0 }
 0x103   : > { %v232_v54 = vadd.f32 %v231_v52, %v208_v53 }
 0x105   : > { %v233_v55 = vmin.f32 %v232_v54, 2.1474836e+09 }
 0x107   : > { %v234_v56 = vmax.f32 %v233_v55, 1.0 }
 0x109   : > { %419 = vrcp.f32 %v234_v56 }
 0x113   : > { %v420_v57 = vpop.eup %419 }
 0x114   : > { %v236_v58 = vmul.f32 2.1474836e+09, %v420_v57 }
 0x116   : > { %v237_v59 = vfloor.f32 %v236_v58 }
 0x118   : > { %v238_v60 = vmul.f32 %v237_v59, %v208_v53 }
 0x11a   : > { %v239_v61 = vmul.f32 5.9604645e-08, %v238_v60 }
 0x11c   : > { %v240_v62 = vfloor.f32 %v239_v61 }
 0x11e   : > { %v241_v0 = vmul.f32 %v240_v62, %v713_v2 }
 0x120   : > { %v243_v1 = vmul.f32 %v242_v63, %v241_v0 }
 0x122   : > { %244 = vst.msk [vmem:[%s170_s27] sm:$0xff] %vm178_vm0, %v243_v1 }
 0x123   : > { %477 = shalt.err (!%p474_p0)
}
 0x124   : > { %s478_s19 = scalar_lea.hbm %s725_s3, 128  ;;  %s482_s23 = scalar_lea.hbm %s772_s2, 256 }
 0x125   : > { %p479_p3 = scmp.ne.s32.totalorder %s725_s3, %s478_s19  ;;  %p483_p6 = scmp.lt.u32.totalorder %s725_s3, %s772_s2 }
 0x126   : > { %p484_p13 = scmp.lt.u32.totalorder %s482_s23, %s478_s19  ;;  %p486_p8 = scmp.lt.u32.totalorder %s478_s19, %s725_s3 }
 0x127   : > { %p480_p7 = pnand %p479_p3, %p787_p9 }
 0x128   : > { %p485_p4 = por %p484_p13, %p483_p6 }
 0x129   : > { %p481_p10 = pneg %p480_p7 }
 0x12a   : > { %p487_p11 = por %p486_p8, %p485_p4 }
 0x12c   : > { %p488_p5 = pnand %p487_p11, %p481_p10 }
 0x12e   : > { %491 = shalt.err (!%p488_p5)
}
 0x12f   : > { %368 = dma.vmem_to_hbm [thread:$0]  (%p787_p9), %s727_s28, 128, %s725_s3, %s246_s4  }
 0x130 PF: > { %s271_s24 = sand.u32 1, %s522_s9   ;;  %p788_p1 = scmp.ne.s32.totalorder %s777_s16, 0 }
 0x131   : > { %p789_p2 = scmp.ge.s32.totalorder %s534_s12, 2  ;;  %s272_s15 = scalar_lea.sflag [#allocation4], %s271_s24 }
 0x133   : > { %p379_p12 = pnand %p789_p2, %p788_p1 }
 0x135   : > { %517 = dma.done.wait (!%p379_p12), %s272_s15, 128  }
 0x136   : > { %519 = vsyncadd (!%p379_p12), %s272_s15, 4294967168  ;;  %p16_p0 = scmp.ge.s32.totalorder %s600_s18, 4   ;;  %s790_s9 = smov %s526_s10 }
 0x137   : > { %s791_s10 = smov %s530_s11  ;;  %s792_s11 = smov %s640_s5 }
 0x138   : > { %s793_s12 = smov %s600_s18  ;;  %18 = sbr.rel (!%p16_p0) target bundleno = 6 (0x6), region = 78 }
 0x13f   :  { %277 = vsyncpa [#allocation3], 1 }
 0x140   :  { %279 = vsyncpa [#allocation3 + $0x1], 1 }
 0x141   :  { %280 = vsyncpa [#allocation4], 1 }
 0x142   :  { %282 = vsyncpa [#allocation4 + $0x1], 1 }
 0x143   :  { %283 = vsyncpa [#allocation5], 1 }
 0x144   :  { %285 = vsyncpa [#allocation5 + $0x1], 1 }

</bundles_post_ra>
